<compile_context>
chip_gen: v5e
topology: v5e:2x2
jax: 0.10.0
libtpu: 0.0.40
codegen_flags: <defaults>
</compile_context>

<pallas_src>
import functools

import jax
import jax.numpy as jnp
from jax.experimental import pallas as pl
from jax.experimental.pallas import tpu as pltpu

# Conservative single-block budget: double-buffered in+out must fit well under
# v7x's 32 MiB scoped-VMEM default (64 MiB physical); v5e/v6e have more room.
_VMEM_BUDGET_BYTES = 16 << 20


def _pad_rows_kernel(x_ref, o_ref, *, lead, size):
    """Lane-dense path for H-only / zero padding.

    x_ref: (N*C, H*W), o_ref: (N*C, H_out*W).  The pad is purely along the
    last (lane) axis as leading/trailing zeros, so the interior store is one
    contiguous row-range write.
    """
    if lead > 0 or size < o_ref.shape[1]:
        o_ref[...] = jnp.zeros_like(o_ref)
    o_ref[:, lead:lead + size] = x_ref[...]


def _pad_nchw_kernel(x_ref, o_ref, *, h_top, w_left, H, W):
    """General path (W padding present): zero-then-overwrite, 2 stores total.

    x_ref: (bn, C, H, W), o_ref: (bn, C, H_out, W_out).  All offsets static.
    """
    o_ref[...] = jnp.zeros_like(o_ref)
    o_ref[:, :, h_top:h_top + H, w_left:w_left + W] = x_ref[...]


def custom_pad(x, padding):
    """Pallas equivalent of F.pad(x, padding) for 4-D NCHW input and a
    length-4 constant-zero padding tuple (w_left, w_right, h_top, h_bottom)."""
    assert x.ndim == 4, "expected NCHW input"
    assert len(padding) == 4, "expected (w_left, w_right, h_top, h_bottom)"
    # TODO(synk): F.pad also accepts negative pads (cropping); not implemented.
    assert all(p >= 0 for p in padding), "negative (crop) padding not supported"
    w_left, w_right, h_top, h_bottom = padding

    N, C, H, W = x.shape
    H_out = H + h_top + h_bottom
    W_out = W + w_left + w_right

    itemsize = jnp.dtype(x.dtype).itemsize
    in_bytes = N * C * H * W * itemsize
    out_bytes = N * C * H_out * W_out * itemsize
    cost = pl.CostEstimate(
        flops=0,
        transcendentals=0,
        bytes_accessed=in_bytes + out_bytes,
    )
    fits_single = 2 * (in_bytes + out_bytes) <= _VMEM_BUDGET_BYTES

    # ---- Lane-dense specialization: no W padding -> fold (H, W) last dims.
    if fits_single and w_left == 0 and w_right == 0:
        rows = N * C
        x2 = x.reshape(rows, H * W)
        kernel = functools.partial(_pad_rows_kernel, lead=h_top * W, size=H * W)
        out2 = pl.pallas_call(
            kernel,
            out_shape=jax.ShapeDtypeStruct((rows, H_out * W), x.dtype),
            grid_spec=pltpu.PrefetchScalarGridSpec(
                num_scalar_prefetch=0,
                grid=(1,),  # single step: one input DMA, one output DMA
                in_specs=[pl.BlockSpec((rows, H * W), lambda i: (0, 0))],
                out_specs=pl.BlockSpec((rows, H_out * W), lambda i: (0, 0)),
            ),
            cost_estimate=cost,
        )(x2)
        return out2.reshape(N, C, H_out, W)

    # ---- General NCHW path. Single step when it fits; otherwise tile over N.
    if fits_single:
        bn = N
    else:
        per_n = 2 * (C * H * W + C * H_out * W_out) * itemsize  # double-buffered
        bn = max(1, min(N, _VMEM_BUDGET_BYTES // max(per_n, 1)))
        while N % bn:  # keep index maps simple: bn must divide N
            bn -= 1

    kernel = functools.partial(
        _pad_nchw_kernel, h_top=h_top, w_left=w_left, H=H, W=W
    )
    return pl.pallas_call(
        kernel,
        out_shape=jax.ShapeDtypeStruct((N, C, H_out, W_out), x.dtype),
        grid_spec=pltpu.PrefetchScalarGridSpec(
            num_scalar_prefetch=0,
            grid=(N // bn,),
            in_specs=[
                # Last two dims equal the full array extents, so the (8, 128)
                # divisibility rule does not apply.
                pl.BlockSpec((bn, C, H, W), lambda i: (i, 0, 0, 0)),
            ],
            out_specs=pl.BlockSpec(
                (bn, C, H_out, W_out), lambda i: (i, 0, 0, 0)
            ),
        ),
        cost_estimate=cost,
    )(x)


if __name__ == "__main__":
    key = jax.random.PRNGKey(0)
    # Small NCHW input consistent with EEGInception conv blocks.
    x = jax.random.normal(key, (2, 4, 16, 16), dtype=jnp.float32)

    # Same padding convention as torch.nn.functional.pad on the last 2 dims:
    # (w_left, w_right, h_top, h_bottom)
    padding = (1, 2, 3, 4)

    out = jax.block_until_ready(custom_pad(x, padding))
    ref = jnp.pad(
        x,
        ((0, 0), (0, 0), (padding[2], padding[3]), (padding[0], padding[1])),
    )
    assert out.shape == ref.shape, (out.shape, ref.shape)
    assert jnp.allclose(out, ref), "mismatch vs reference pad (general path)"

    # No padding (lane-dense path, zero store statically skipped).
    out2 = jax.block_until_ready(custom_pad(x, (0, 0, 0, 0)))
    assert jnp.array_equal(out2, x)

    # W-only padding (general NCHW path).
    out3 = jax.block_until_ready(custom_pad(x, (3, 3, 0, 0)))
    ref3 = jnp.pad(x, ((0, 0), (0, 0), (0, 0), (3, 3)))
    assert jnp.allclose(out3, ref3), "mismatch vs reference pad (W-only)"

    # H-only padding (lane-dense path).
    out4 = jax.block_until_ready(custom_pad(x, (0, 0, 2, 2)))
    ref4 = jnp.pad(x, ((0, 0), (0, 0), (2, 2), (0, 0)))
    assert jnp.allclose(out4, ref4), "mismatch vs reference pad (H-only)"

    print("KERNEL_OK")
</pallas_src>

<mosaic_0001>
module attributes {stable_mosaic.version = 11 : i64} {
  func.func @_pad_nchw_kernel(%arg0: i32, %arg1: memref<2x4x16x16xf32, #tpu.memory_space<vmem>>, %arg2: memref<2x4x23x19xf32, #tpu.memory_space<vmem>>) attributes {dimension_semantics = [#tpu.dimension_semantics<arbitrary>], iteration_bounds = array<i64: 1>, scalar_prefetch = 0 : i64, scratch_operands = 0 : i64, tpu.core_type = #tpu.core_type<tc>, window_params = [{transform_indices = @transform_0, window_bounds = array<i64: 2, 4, 16, 16>}, {transform_indices = @transform_1, window_bounds = array<i64: 2, 4, 23, 19>}]} {
    %cst = arith.constant 0.000000e+00 : f32
    %0 = vector.broadcast %cst : f32 to vector<2x4x23x19xf32>
    %c0 = arith.constant 0 : index
    %c0_0 = arith.constant 0 : index
    %c0_1 = arith.constant 0 : index
    %c0_2 = arith.constant 0 : index
    %1 = vector.load %arg2[%c0, %c0_0, %c0_1, %c0_2] : memref<2x4x23x19xf32, #tpu.memory_space<vmem>>, vector<2x4x23x19xf32>
    tpu.vector_store %arg2[%c0, %c0_0, %c0_1, %c0_2], %0 {strides = array<i32>} : memref<2x4x23x19xf32, #tpu.memory_space<vmem>>, vector<2x4x23x19xf32>,
    %c0_3 = arith.constant 0 : index
    %c0_4 = arith.constant 0 : index
    %c0_5 = arith.constant 0 : index
    %c0_6 = arith.constant 0 : index
    %2 = vector.load %arg1[%c0_3, %c0_4, %c0_5, %c0_6] : memref<2x4x16x16xf32, #tpu.memory_space<vmem>>, vector<2x4x16x16xf32>
    %c0_7 = arith.constant 0 : index
    %c0_8 = arith.constant 0 : index
    %c3 = arith.constant 3 : index
    %c1 = arith.constant 1 : index
    %3 = vector.load %arg2[%c0_7, %c0_8, %c3, %c1] : memref<2x4x23x19xf32, #tpu.memory_space<vmem>>, vector<2x4x16x16xf32>
    tpu.vector_store %arg2[%c0_7, %c0_8, %c3, %c1], %2 {strides = array<i32>} : memref<2x4x23x19xf32, #tpu.memory_space<vmem>>, vector<2x4x16x16xf32>,
    return
  }
  func.func @transform_0(%arg0: i32) -> (i32, i32, i32, i32) {
    %c0_i32 = arith.constant 0 : i32
    %c0_i32_0 = arith.constant 0 : i32
    %c0_i32_1 = arith.constant 0 : i32
    %c0_i32_2 = arith.constant 0 : i32
    return %arg0, %c0_i32, %c0_i32_0, %c0_i32_1 : i32, i32, i32, i32
  }
  func.func @transform_1(%arg0: i32) -> (i32, i32, i32, i32) {
    %c0_i32 = arith.constant 0 : i32
    %c0_i32_0 = arith.constant 0 : i32
    %c0_i32_1 = arith.constant 0 : i32
    %c0_i32_2 = arith.constant 0 : i32
    return %arg0, %c0_i32, %c0_i32_0, %c0_i32_1 : i32, i32, i32, i32
  }
}

</mosaic_0001>

<bundles_post_ra>
// kernel: tpu_custom_call.1
= control target key start
LH: loop header
LB: loop body
LE: loop exit
PB: predicated region body
PF: predicated region fallthrough
CT: control target
= control target key end

     0   :  { %6 = vsyncpa [#allocation3], 0  ;;  %s183_s9 = smov [#allocation2]   ;;  %s184_s11 = smov 128   ;;  %s369_s0 = inlined_call_operand.hbm [shape: f32[2,4,16,16], index: 0, kind: input, shape index: {}]   ;;  %s370_s1 = inlined_call_operand.vmem [shape: f32[2,4,23,19], index: 1, kind: output, shape index: {}]  }
   0x1   :  { %s11_s8 = sshll.u32 %s369_s0, 4  ;;  %s13_s10 = sshll.u32 %s183_s9, 4  ;;  %s12_s8 = int_to_ptr.hbm [resolvable:$true] %s11_s8  ;;  %s14_s10 = int_to_ptr.vmem [resolvable:$true] %s13_s10 }
   0x2   :  { %s185_s12 = smov 8  }
   0x3   :  { %19 = dma.hbm_to_vmem [thread:$0]  %s12_s8, 2048, %s14_s10, [#allocation3], %s184_s11, %s184_s11, %s185_s12  }
   0x4   :  { %181 = dma.done.wait [#allocation3], 2048  }
   0x5   :  { %182 = vsyncadd [#allocation3], 4294965248  ;;  %v50_v0 = vld [vmem:[#allocation2] sm:$0xff]  ;;  %v52_v1 = vld [vmem:[#allocation2 + $0x10] sm:$0xff]  ;;  %s186_s13 = smov 1   ;;  %vm24_vm0 = vcmask 154624  }
   0x6   :  { %82 = vrot.lane.b32.xlu0 %v50_v0, %s186_s13  ;;  %86 = vrot.lane.b32.xlu1 %v52_v1, %s186_s13  ;;  %v54_v2 = vld [vmem:[#allocation2 + $0x20] sm:$0xff]  ;;  %v51_v3 = vld [vmem:[#allocation2 + $0x8] sm:$0xff]  ;;  %v53_v4 = vld [vmem:[#allocation2 + $0x18] sm:$0xff]  ;;  %v187_v6 = vmov 0.0   ;;  %vm27_vm1 = vcmask 153600   ;;  %vm130_vm2 = vcmask 138248  }
   0x7   :  { %90 = vrot.lane.b32.xlu2 %v54_v2, %s186_s13  ;;  %v55_v5 = vld [vmem:[#allocation2 + $0x28] sm:$0xff]  ;;  %25 = vst.msk [vmem:[%s370_s1] sm:$0xff] %vm24_vm0, %v187_v6  ;;  %v56_v7 = vld [vmem:[#allocation2 + $0x30] sm:$0xff]  ;;  %v57_v8 = vld [vmem:[#allocation2 + $0x38] sm:$0xff] }
   0x8   :  { %26 = vst.msk [vmem:[%s370_s1 + $0x8] sm:$0xff] %vm24_vm0, %v187_v6  ;;  %v58_v9 = vld [vmem:[#allocation2 + $0x40] sm:$0xff]  ;;  %v59_v10 = vld [vmem:[#allocation2 + $0x48] sm:$0xff]  ;;  %v60_v11 = vld [vmem:[#allocation2 + $0x50] sm:$0xff] }
   0x9   :  { %29 = vst.msk [vmem:[%s370_s1 + $0x18] sm:$0xff] %vm24_vm0, %v187_v6  ;;  %v61_v12 = vld [vmem:[#allocation2 + $0x58] sm:$0xff]  ;;  %v62_v13 = vld [vmem:[#allocation2 + $0x60] sm:$0xff]  ;;  %v63_v14 = vld [vmem:[#allocation2 + $0x68] sm:$0xff] }
   0xa   :  { %30 = vst.msk [vmem:[%s370_s1 + $0x20] sm:$0xff] %vm24_vm0, %v187_v6  ;;  %v64_v15 = vld [vmem:[#allocation2 + $0x70] sm:$0xff]  ;;  %v65_v16 = vld [vmem:[#allocation2 + $0x78] sm:$0xff] }
   0xb   :  { %32 = vst.msk [vmem:[%s370_s1 + $0x30] sm:$0xff] %vm24_vm0, %v187_v6 }
   0xc   :  { %33 = vst.msk [vmem:[%s370_s1 + $0x38] sm:$0xff] %vm24_vm0, %v187_v6 }
   0xd   :  { %35 = vst.msk [vmem:[%s370_s1 + $0x48] sm:$0xff] %vm24_vm0, %v187_v6 }
   0xe   :  { %84 = vrot.lane.b32.xlu0 %v51_v3, %s186_s13  ;;  %88 = vrot.lane.b32.xlu1 %v53_v4, %s186_s13  ;;  %36 = vst.msk [vmem:[%s370_s1 + $0x50] sm:$0xff] %vm24_vm0, %v187_v6 }
   0xf   :  { %92 = vrot.lane.b32.xlu2 %v55_v5, %s186_s13  ;;  %38 = vst.msk [vmem:[%s370_s1 + $0x60] sm:$0xff] %vm24_vm0, %v187_v6 }
  0x10   :  { %39 = vst.msk [vmem:[%s370_s1 + $0x68] sm:$0xff] %vm24_vm0, %v187_v6 }
  0x11   :  { %41 = vst.msk [vmem:[%s370_s1 + $0x78] sm:$0xff] %vm24_vm0, %v187_v6 }
  0x12   :  { %42 = vst.msk [vmem:[%s370_s1 + $0x80] sm:$0xff] %vm24_vm0, %v187_v6 }
  0x13   :  { %44 = vst.msk [vmem:[%s370_s1 + $0x90] sm:$0xff] %vm24_vm0, %v187_v6 }
  0x14   :  { %45 = vst.msk [vmem:[%s370_s1 + $0x98] sm:$0xff] %vm24_vm0, %v187_v6 }
  0x15   :  { %47 = vst.msk [vmem:[%s370_s1 + $0xa8] sm:$0xff] %vm24_vm0, %v187_v6 }
  0x16   :  { %94 = vrot.lane.b32.xlu0 %v56_v7, %s186_s13  ;;  %96 = vrot.lane.b32.xlu1 %v57_v8, %s186_s13  ;;  %48 = vst.msk [vmem:[%s370_s1 + $0xb0] sm:$0xff] %vm24_vm0, %v187_v6 }
  0x17   :  { %98 = vrot.lane.b32.xlu2 %v58_v9, %s186_s13  ;;  %28 = vst.msk [vmem:[%s370_s1 + $0x10] sm:$0x7f] %vm27_vm1, %v187_v6 }
  0x18   :  { %31 = vst.msk [vmem:[%s370_s1 + $0x28] sm:$0x7f] %vm27_vm1, %v187_v6 }
  0x19   :  { %34 = vst.msk [vmem:[%s370_s1 + $0x40] sm:$0x7f] %vm27_vm1, %v187_v6 }
  0x1a   :  { %37 = vst.msk [vmem:[%s370_s1 + $0x58] sm:$0x7f] %vm27_vm1, %v187_v6 }
  0x1b   :  { %40 = vst.msk [vmem:[%s370_s1 + $0x70] sm:$0x7f] %vm27_vm1, %v187_v6 }
  0x1c   :  { %43 = vst.msk [vmem:[%s370_s1 + $0x88] sm:$0x7f] %vm27_vm1, %v187_v6 }
  0x1d   :  { %46 = vst.msk [vmem:[%s370_s1 + $0xa0] sm:$0x7f] %vm27_vm1, %v187_v6 }
  0x1e   :  { %100 = vrot.lane.b32.xlu0 %v59_v10, %s186_s13  ;;  %102 = vrot.lane.b32.xlu1 %v60_v11, %s186_s13  ;;  %49 = vst.msk [vmem:[%s370_s1 + $0xb8] sm:$0x7f] %vm27_vm1, %v187_v6 }
  0x1f   :  { %104 = vrot.lane.b32.xlu2 %v61_v12, %s186_s13 }
  0x26   :  { %106 = vrot.lane.b32.xlu0 %v62_v13, %s186_s13  ;;  %108 = vrot.lane.b32.xlu1 %v63_v14, %s186_s13 }
  0x27   :  { %110 = vrot.lane.b32.xlu2 %v64_v15, %s186_s13 }
  0x2e   :  { %112 = vrot.lane.b32.xlu0 %v65_v16, %s186_s13 }
  0x61   :  { %v91_v17 = vpop.permute.xlu2 %90 }
  0x62   :  { %135 = vst.msk [vmem:[%s370_s1 + $0x33] sm:$0xff] %vm130_vm2, %v91_v17 }
  0x69   :  { %v93_v18 = vpop.permute.xlu2 %92 }
  0x6a   :  { %136 = vst.msk [vmem:[%s370_s1 + $0x3b] sm:$0xff] %vm130_vm2, %v93_v18 }
  0x71   :  { %v99_v19 = vpop.permute.xlu2 %98 }
  0x72   :  { %139 = vst.msk [vmem:[%s370_s1 + $0x63] sm:$0xff] %vm130_vm2, %v99_v19 }
  0x78   :  { %v83_v20 = vpop.permute.xlu0 %82  ;;  %v87_v21 = vpop.permute.xlu1 %86 }
  0x79   :  { %131 = vst.msk [vmem:[%s370_s1 + $0x3] sm:$0xff] %vm130_vm2, %v83_v20  ;;  %v105_v22 = vpop.permute.xlu2 %104 }
  0x7a   :  { %133 = vst.msk [vmem:[%s370_s1 + $0x1b] sm:$0xff] %vm130_vm2, %v87_v21 }
  0x7b   :  { %142 = vst.msk [vmem:[%s370_s1 + $0x83] sm:$0xff] %vm130_vm2, %v105_v22 }
  0x80   :  { %v85_v23 = vpop.permute.xlu0 %84  ;;  %v89_v24 = vpop.permute.xlu1 %88 }
  0x81   :  { %132 = vst.msk [vmem:[%s370_s1 + $0xb] sm:$0xff] %vm130_vm2, %v85_v23  ;;  %v111_v25 = vpop.permute.xlu2 %110 }
  0x82   :  { %134 = vst.msk [vmem:[%s370_s1 + $0x23] sm:$0xff] %vm130_vm2, %v89_v24 }
  0x83   :  { %145 = vst.msk [vmem:[%s370_s1 + $0xab] sm:$0xff] %vm130_vm2, %v111_v25 }
  0x88   :  { %v95_v26 = vpop.permute.xlu0 %94  ;;  %v97_v27 = vpop.permute.xlu1 %96 }
  0x89   :  { %137 = vst.msk [vmem:[%s370_s1 + $0x4b] sm:$0xff] %vm130_vm2, %v95_v26 }
  0x8a   :  { %138 = vst.msk [vmem:[%s370_s1 + $0x53] sm:$0xff] %vm130_vm2, %v97_v27 }
  0x90   :  { %v101_v28 = vpop.permute.xlu0 %100  ;;  %v103_v29 = vpop.permute.xlu1 %102 }
  0x91   :  { %140 = vst.msk [vmem:[%s370_s1 + $0x6b] sm:$0xff] %vm130_vm2, %v101_v28 }
  0x92   :  { %141 = vst.msk [vmem:[%s370_s1 + $0x7b] sm:$0xff] %vm130_vm2, %v103_v29 }
  0x98   :  { %v107_v30 = vpop.permute.xlu0 %106  ;;  %v109_v31 = vpop.permute.xlu1 %108 }
  0x99   :  { %143 = vst.msk [vmem:[%s370_s1 + $0x93] sm:$0xff] %vm130_vm2, %v107_v30 }
  0x9a   :  { %144 = vst.msk [vmem:[%s370_s1 + $0x9b] sm:$0xff] %vm130_vm2, %v109_v31 }
  0xa0   :  { %v113_v32 = vpop.permute.xlu0 %112 }
  0xa1   :  { %146 = vst.msk [vmem:[%s370_s1 + $0xb3] sm:$0xff] %vm130_vm2, %v113_v32 }
  0xa2   :  { %151 = vsyncpa [#allocation3], 1 }

</bundles_post_ra>
